<compile_context>
chip_gen: v6e
topology: v6e:2x2x1
jax: 0.10.0
libtpu: 0.0.40
codegen_flags: <defaults>
</compile_context>

<pallas_src>
import functools

import jax
import jax.numpy as jnp
from jax.experimental import pallas as pl
from jax.experimental.pallas import tpu as pltpu


_LANE = 128
_ROW_GRANULE = 16  # bf16 packs two rows per sublane -> 16-row tiles


def _round_up(x: int, m: int) -> int:
    return ((x + m - 1) // m) * m


def _make_fused_mlp_kernel(n_layers: int):
    """Kernel computing the whole MLP for one batch tile.

    Ref layout (all VMEM):
      x_ref : [TM, Din]            f32  (cast to bf16 inside the kernel)
      per layer i:
        w_ref_i : [Din_i, Dout_i]  bf16 (pre-transposed [in, out]; last layer
                                         out-dim zero-padded to 128 lanes)
        b_ref_i : [1, Dout_i]      f32
      o_ref : [TM, Dout_pad]       f32
    """

    def kernel(x_ref, *refs):
        o_ref = refs[-1]
        wb = refs[:-1]
        # f32 -> bf16 cast happens here, in VMEM/vregs, instead of as a
        # separate XLA op that would re-read/re-write x in HBM.
        h = x_ref[...].astype(jnp.bfloat16)
        for i in range(n_layers):
            w = wb[2 * i][...]
            b = wb[2 * i + 1][...]
            # bf16 x bf16 -> f32 accumulate on the MXU; bias-add in f32 (VPU).
            y = jnp.dot(h, w, preferred_element_type=jnp.float32) + b
            if i != n_layers - 1:
                h = jnp.maximum(y, 0.0).astype(jnp.bfloat16)  # hidden: ReLU
            else:
                h = y  # last layer: output_activation = identity
        o_ref[...] = h.astype(o_ref.dtype)

    return kernel


def prepare_params(pytorch_params):
    """One-time conversion of PyTorch-layout params to kernel layout.

    Input : list of (W [out, in] f32, b [out] f32)   (nn.Linear convention)
    Output: (layers, out_features) where layers is a list of
            (W_t [in, out(_pad)] bf16, b [1, out(_pad)] f32).
    Only the LAST layer's out-dim is zero-padded to a 128-lane multiple so the
    kernel's HBM writeback is lane-dense (hidden activations never leave VMEM,
    so their widths are left untouched).
    """
    n = len(pytorch_params)
    layers = []
    out_features = None
    for i, (W, b) in enumerate(pytorch_params):
        W_t = jnp.asarray(W, jnp.float32).T.astype(jnp.bfloat16)  # [in, out]
        b2 = jnp.asarray(b, jnp.float32).reshape(1, -1)
        if i == n - 1:
            out_features = int(W_t.shape[1])
            out_pad = _round_up(out_features, _LANE)
            if out_pad != out_features:
                W_t = jnp.pad(W_t, ((0, 0), (0, out_pad - out_features)))
                b2 = jnp.pad(b2, ((0, 0), (0, out_pad - out_features)))
        layers.append((W_t, b2))
    return layers, out_features


@functools.partial(jax.jit, static_argnames=("out_features", "tm_max"))
def multi_linear_net_forward(x, layers, out_features, *, tm_max: int = 1024):
    """Fused forward pass.

    x:            [B, ...] input, flattened like torch's x.view(B, -1); f32.
    layers:       output of prepare_params()[0]
    out_features: output of prepare_params()[1] (un-padded last-layer width)
    """
    B = x.shape[0]
    h = x.reshape(B, -1)  # x.view(x.size(0), -1); stays f32, no wrapper cast/pad
    Din = h.shape[1]
    n_layers = len(layers)
    Dout_pad = layers[-1][0].shape[1]

    weight_bytes = sum(
        w.size * w.dtype.itemsize + b.size * b.dtype.itemsize for w, b in layers
    )
    max_w = max(w.shape[1] for w, _ in layers)

    # ---- batch tile selection -------------------------------------------
    # Big tiles amortize per-grid-step overhead (HBM-roofline); for moderate
    # or large B keep >= 2 grid steps so both v7x TensorCores get work;
    # cap the tile so the double-buffered x/out blocks + weights fit VMEM.
    budget = 28 * 1024 * 1024  # stay under the 32 MiB scoped limit, with slack
    per_row = 2 * Din * 4 + 2 * Dout_pad * 4 + max_w * 8  # x dbuf + out dbuf + act headroom
    avail = budget - 2 * weight_bytes
    tm_fit = max(_ROW_GRANULE, (avail // per_row) // _ROW_GRANULE * _ROW_GRANULE)
    if B <= 2 * _ROW_GRANULE:
        tm = _round_up(B, _ROW_GRANULE)            # tiny batch: one tile
    else:
        tm = _round_up(pl.cdiv(B, 2), _ROW_GRANULE)  # >= 2 steps -> 2-TC split
    tm = min(tm, tm_max, tm_fit)
    grid_m = pl.cdiv(B, tm)

    # VMEM limit from the actual resident footprint (+ headroom), clamped to a
    # range that is valid on v5e / v6e / v7x.
    vmem_limit = 2 * weight_bytes + tm * per_row + (2 << 20)
    vmem_limit = int(min(max(vmem_limit, 8 << 20), 32 << 20))

    # BlockSpecs: x/out tiled over the batch grid axis (edge blocks masked by
    # Pallas); weights/bias are whole-array blocks shared by every grid step.
    in_specs = [pl.BlockSpec((tm, Din), lambda m: (m, 0))]
    inputs = [h]
    for w_t, b2 in layers:
        din_i, dout_i = w_t.shape
        in_specs.append(pl.BlockSpec((din_i, dout_i), lambda m: (0, 0)))
        in_specs.append(pl.BlockSpec((1, dout_i), lambda m: (0, 0)))
        inputs.append(w_t)
        inputs.append(b2)

    flops = 2 * B * sum(w.shape[0] * w.shape[1] for w, _ in layers)
    bytes_accessed = B * Din * 4 + weight_bytes + B * Dout_pad * 4

    out = pl.pallas_call(
        _make_fused_mlp_kernel(n_layers),
        out_shape=jax.ShapeDtypeStruct((B, Dout_pad), jnp.float32),
        grid=(grid_m,),
        in_specs=in_specs,
        out_specs=pl.BlockSpec((tm, Dout_pad), lambda m: (m, 0)),
        compiler_params=pltpu.CompilerParams(
            dimension_semantics=("parallel",),  # batch rows split across TCs (v7x)
            vmem_limit_bytes=vmem_limit,
        ),
        cost_estimate=pl.CostEstimate(
            flops=int(flops),
            transcendentals=0,
            bytes_accessed=int(bytes_accessed),
        ),
    )(*inputs)
    # Lane-dense kernel output; drop the zero-padded columns here (tiny copy).
    return out[:, :out_features]


def init_params(key, dims):
    """Deterministic PyTorch-nn.Linear-style init for dims=[d0, d1, ..., dL]."""
    params = []
    for i in range(len(dims) - 1):
        fan_in, fan_out = dims[i], dims[i + 1]
        key, kw, kb = jax.random.split(key, 3)
        bound = 1.0 / jnp.sqrt(fan_in)
        W = jax.random.uniform(kw, (fan_out, fan_in), jnp.float32, -bound, bound)
        b = jax.random.uniform(kb, (fan_out,), jnp.float32, -bound, bound)
        params.append((W, b))
    return params


if __name__ == "__main__":
    key = jax.random.PRNGKey(0)
    k_x, k_p = jax.random.split(key)

    # Small example input consistent with the flatten-then-MLP forward.
    B, C, H, W = 2, 4, 16, 16
    x = jax.random.normal(k_x, (B, C, H, W), jnp.float32)

    # dim = [dim_in, hidden, ..., dim_out]
    dims = [C * H * W, 64, 32, 8]
    pytorch_params = init_params(k_p, dims)          # PyTorch layout [out, in]
    layers, out_features = prepare_params(pytorch_params)

    out = multi_linear_net_forward(x, layers, out_features)
    jax.block_until_ready(out)

    # Pure-JAX reference using the same bf16 weights / f32 accumulation.
    ref = x.reshape(B, -1).astype(jnp.bfloat16)
    for idx, (w_t, b2) in enumerate(layers):
        y = jnp.dot(ref, w_t, preferred_element_type=jnp.float32) + b2
        if idx != len(layers) - 1:
            ref = jnp.maximum(y, 0.0).astype(jnp.bfloat16)
        else:
            ref = y
    ref = ref[:, :out_features]

    assert out.shape == (B, dims[-1]), out.shape
    assert jnp.allclose(out, ref, atol=2e-2, rtol=2e-2), (
        f"max abs err {jnp.max(jnp.abs(out - ref))}"
    )

    print("KERNEL_OK")
</pallas_src>

<mosaic_0001>
module attributes {stable_mosaic.version = 11 : i64} {
  func.func @kernel(%arg0: i32, %arg1: memref<16x1024xf32, #tpu.memory_space<vmem>>, %arg2: memref<1024x64xbf16, #tpu.memory_space<vmem>>, %arg3: memref<1x64xf32, #tpu.memory_space<vmem>>, %arg4: memref<64x32xbf16, #tpu.memory_space<vmem>>, %arg5: memref<1x32xf32, #tpu.memory_space<vmem>>, %arg6: memref<32x128xbf16, #tpu.memory_space<vmem>>, %arg7: memref<1x128xf32, #tpu.memory_space<vmem>>, %arg8: memref<16x128xf32, #tpu.memory_space<vmem>>) attributes {dimension_semantics = [#tpu.dimension_semantics<parallel>], iteration_bounds = array<i64: 1>, scalar_prefetch = 0 : i64, scratch_operands = 0 : i64, tpu.core_type = #tpu.core_type<tc>, window_params = [{transform_indices = @transform_0, window_bounds = array<i64: 16, 1024>}, {pipeline_mode = #tpu.pipeline_mode<synchronous>, transform_indices = @transform_1, window_bounds = array<i64: 1024, 64>}, {pipeline_mode = #tpu.pipeline_mode<synchronous>, transform_indices = @transform_2, window_bounds = array<i64: 1, 64>}, {pipeline_mode = #tpu.pipeline_mode<synchronous>, transform_indices = @transform_3, window_bounds = array<i64: 64, 32>}, {pipeline_mode = #tpu.pipeline_mode<synchronous>, transform_indices = @transform_4, window_bounds = array<i64: 1, 32>}, {pipeline_mode = #tpu.pipeline_mode<synchronous>, transform_indices = @transform_5, window_bounds = array<i64: 32, 128>}, {pipeline_mode = #tpu.pipeline_mode<synchronous>, transform_indices = @transform_6, window_bounds = array<i64: 1, 128>}, {transform_indices = @transform_7, window_bounds = array<i64: 16, 128>}]} {
    %c0 = arith.constant 0 : index
    %c0_0 = arith.constant 0 : index
    %0 = vector.load %arg1[%c0, %c0_0] : memref<16x1024xf32, #tpu.memory_space<vmem>>, vector<16x1024xf32>
    %1 = arith.truncf %0 : vector<16x1024xf32> to vector<16x1024xbf16>
    %c0_1 = arith.constant 0 : index
    %c0_2 = arith.constant 0 : index
    %2 = vector.load %arg2[%c0_1, %c0_2] : memref<1024x64xbf16, #tpu.memory_space<vmem>>, vector<1024x64xbf16>
    %c0_3 = arith.constant 0 : index
    %c0_4 = arith.constant 0 : index
    %3 = vector.load %arg3[%c0_3, %c0_4] : memref<1x64xf32, #tpu.memory_space<vmem>>, vector<1x64xf32>
    %cst = arith.constant dense<0.000000e+00> : vector<16x64xf32>
    %4 = tpu.matmul %1, %2, %cst {dimension_numbers = #tpu.dot_dimension_numbers<[1], [0], [0], [1], [0, 0, 1, 1], [], []>} : vector<16x1024xbf16>, vector<1024x64xbf16>, vector<16x64xf32> -> vector<16x64xf32>
    %5 = vector.broadcast %3 : vector<1x64xf32> to vector<16x64xf32>
    %6 = arith.addf %4, %5 : vector<16x64xf32>
    %cst_5 = arith.constant 0.000000e+00 : f32
    %7 = vector.broadcast %cst_5 : f32 to vector<16x64xf32>
    %8 = arith.maximumf %6, %7 : vector<16x64xf32>
    %9 = arith.truncf %8 : vector<16x64xf32> to vector<16x64xbf16>
    %c0_6 = arith.constant 0 : index
    %c0_7 = arith.constant 0 : index
    %10 = vector.load %arg4[%c0_6, %c0_7] : memref<64x32xbf16, #tpu.memory_space<vmem>>, vector<64x32xbf16>
    %c0_8 = arith.constant 0 : index
    %c0_9 = arith.constant 0 : index
    %11 = vector.load %arg5[%c0_8, %c0_9] : memref<1x32xf32, #tpu.memory_space<vmem>>, vector<1x32xf32>
    %cst_10 = arith.constant dense<0.000000e+00> : vector<16x32xf32>
    %12 = tpu.matmul %9, %10, %cst_10 {dimension_numbers = #tpu.dot_dimension_numbers<[1], [0], [0], [1], [0, 0, 1, 1], [], []>} : vector<16x64xbf16>, vector<64x32xbf16>, vector<16x32xf32> -> vector<16x32xf32>
    %13 = vector.broadcast %11 : vector<1x32xf32> to vector<16x32xf32>
    %14 = arith.addf %12, %13 : vector<16x32xf32>
    %cst_11 = arith.constant 0.000000e+00 : f32
    %15 = vector.broadcast %cst_11 : f32 to vector<16x32xf32>
    %16 = arith.maximumf %14, %15 : vector<16x32xf32>
    %17 = arith.truncf %16 : vector<16x32xf32> to vector<16x32xbf16>
    %c0_12 = arith.constant 0 : index
    %c0_13 = arith.constant 0 : index
    %18 = vector.load %arg6[%c0_12, %c0_13] : memref<32x128xbf16, #tpu.memory_space<vmem>>, vector<32x128xbf16>
    %c0_14 = arith.constant 0 : index
    %c0_15 = arith.constant 0 : index
    %19 = vector.load %arg7[%c0_14, %c0_15] : memref<1x128xf32, #tpu.memory_space<vmem>>, vector<1x128xf32>
    %cst_16 = arith.constant dense<0.000000e+00> : vector<16x128xf32>
    %20 = tpu.matmul %17, %18, %cst_16 {dimension_numbers = #tpu.dot_dimension_numbers<[1], [0], [0], [1], [0, 0, 1, 1], [], []>} : vector<16x32xbf16>, vector<32x128xbf16>, vector<16x128xf32> -> vector<16x128xf32>
    %21 = vector.broadcast %19 : vector<1x128xf32> to vector<16x128xf32>
    %22 = arith.addf %20, %21 : vector<16x128xf32>
    %c0_17 = arith.constant 0 : index
    %c0_18 = arith.constant 0 : index
    %23 = vector.load %arg8[%c0_17, %c0_18] : memref<16x128xf32, #tpu.memory_space<vmem>>, vector<16x128xf32>
    tpu.vector_store %arg8[%c0_17, %c0_18], %22 {strides = array<i32>} : memref<16x128xf32, #tpu.memory_space<vmem>>, vector<16x128xf32>,
    return
  }
  func.func @transform_0(%arg0: i32) -> (i32, i32) {
    %c0_i32 = arith.constant 0 : i32
    %c0_i32_0 = arith.constant 0 : i32
    return %arg0, %c0_i32 : i32, i32
  }
  func.func @transform_1(%arg0: i32) -> (i32, i32) {
    %c0_i32 = arith.constant 0 : i32
    %c0_i32_0 = arith.constant 0 : i32
    %c0_i32_1 = arith.constant 0 : i32
    return %c0_i32, %c0_i32_0 : i32, i32
  }
  func.func @transform_2(%arg0: i32) -> (i32, i32) {
    %c0_i32 = arith.constant 0 : i32
    %c0_i32_0 = arith.constant 0 : i32
    %c0_i32_1 = arith.constant 0 : i32
    return %c0_i32, %c0_i32_0 : i32, i32
  }
  func.func @transform_3(%arg0: i32) -> (i32, i32) {
    %c0_i32 = arith.constant 0 : i32
    %c0_i32_0 = arith.constant 0 : i32
    %c0_i32_1 = arith.constant 0 : i32
    return %c0_i32, %c0_i32_0 : i32, i32
  }
  func.func @transform_4(%arg0: i32) -> (i32, i32) {
    %c0_i32 = arith.constant 0 : i32
    %c0_i32_0 = arith.constant 0 : i32
    %c0_i32_1 = arith.constant 0 : i32
    return %c0_i32, %c0_i32_0 : i32, i32
  }
  func.func @transform_5(%arg0: i32) -> (i32, i32) {
    %c0_i32 = arith.constant 0 : i32
    %c0_i32_0 = arith.constant 0 : i32
    %c0_i32_1 = arith.constant 0 : i32
    return %c0_i32, %c0_i32_0 : i32, i32
  }
  func.func @transform_6(%arg0: i32) -> (i32, i32) {
    %c0_i32 = arith.constant 0 : i32
    %c0_i32_0 = arith.constant 0 : i32
    %c0_i32_1 = arith.constant 0 : i32
    return %c0_i32, %c0_i32_0 : i32, i32
  }
  func.func @transform_7(%arg0: i32) -> (i32, i32) {
    %c0_i32 = arith.constant 0 : i32
    %c0_i32_0 = arith.constant 0 : i32
    return %arg0, %c0_i32 : i32, i32
  }
}

</mosaic_0001>

<bundles_post_ra>
// kernel: multi_linear_net_forward.1
= control target key start
LH: loop header
LB: loop body
LE: loop exit
PB: predicated region body
PF: predicated region fallthrough
CT: control target
= control target key end

     0   :  { %12 = vsyncpa [#allocation3], 0  ;;  %v67_v29 = vlaneseq  ;;  %v1400_v33 = vmov 1983009808   ;;  %vm1402_vm0 = vmmov 0   ;;  %vm953_vm1 = vcmask 523264   ;;  %s1734_s0 = inlined_call_operand.vmem [shape: f32[2,1024], index: 0, kind: input, shape index: {}]   ;;  %s1735_s1 = inlined_call_operand.vmem [shape: bf16[1024,64], index: 1, kind: input, shape index: {}]   ;;  %s1736_s2 = inlined_call_operand.vmem [shape: f32[1,64], index: 2, kind: input, shape index: {}]   ;;  %s1737_s3 = inlined_call_operand.vmem [shape: bf16[64,32], index: 3, kind: input, shape index: {}]   ;;  %s1738_s4 = inlined_call_operand.vmem [shape: f32[1,32], index: 4, kind: input, shape index: {}]   ;;  %s1739_s5 = inlined_call_operand.vmem [shape: bf16[32,128], index: 5, kind: input, shape index: {}]   ;;  %s1740_s6 = inlined_call_operand.vmem [shape: f32[1,128], index: 6, kind: input, shape index: {}]   ;;  %s1741_s7 = inlined_call_operand.hbm [shape: f32[2,128], index: 7, kind: output, shape index: {}]  }
   0x1   :  { %v1284_v0 = vld [vmem:[%s1735_s1 + $0x78] sm:$0xff]   ;;  %v1288_v4 = vld [vmem:[%s1735_s1 + $0x70] sm:$0xff]   ;;  %v1292_v8 = vld [vmem:[%s1735_s1 + $0x68] sm:$0xff]   ;;  %v65_v34 = vunpack.c.l.s4 %v1400_v33  ;;  %vm1024_vm2 = vcmask 261120  }
   0x2   :  { %v1285_v1 = vld [vmem:[%s1735_s1 + $0xf8] sm:$0xff]   ;;  %1162 = vmatprep.subr.bf16.mxu0 %v1284_v0  ;;  %v1289_v5 = vld [vmem:[%s1735_s1 + $0xf0] sm:$0xff]   ;;  %v1293_v9 = vld [vmem:[%s1735_s1 + $0xe8] sm:$0xff]   ;;  %v68_v35 = vshrl.u32 %v67_v29, 7 }
   0x3   :  { %v1286_v2 = vld [vmem:[%s1735_s1 + $0x38] sm:$0xff]   ;;  %1184 = vmatprep.subr.bf16.mxu1 %v1285_v1  ;;  %v1290_v6 = vld [vmem:[%s1735_s1 + $0x30] sm:$0xff]   ;;  %v1294_v10 = vld [vmem:[%s1735_s1 + $0x28] sm:$0xff]   ;;  %v66_v38 = vunpack.c.0.s8 %v65_v34 }
   0x4   :  { %v1287_v3 = vld [vmem:[%s1735_s1 + $0xb8] sm:$0xff]   ;;  %1163 = vmatpush3.bf16.msra.mxu0 %v1286_v2  ;;  %v1291_v7 = vld [vmem:[%s1735_s1 + $0xb0] sm:$0xff]   ;;  %v1295_v11 = vld [vmem:[%s1735_s1 + $0xa8] sm:$0xff]  }
   0x5   :  { %1185 = vmatpush3.bf16.msra.mxu1 %v1287_v3  ;;  %1164 = vmatprep.subr.bf16.mxu0 %v1288_v4  ;;  %v1296_v12 = vld [vmem:[%s1735_s1 + $0x60] sm:$0xff]   ;;  %v1300_v16 = vld [vmem:[%s1735_s1 + $0x58] sm:$0xff]   ;;  %v1304_v20 = vld [vmem:[%s1735_s1 + $0x50] sm:$0xff]   ;;  %v1560_v43 = vsub.s32 %v66_v38, %v68_v35 }
   0x6   :  { %1186 = vmatprep.subr.bf16.mxu1 %v1289_v5  ;;  %v1297_v13 = vld [vmem:[%s1735_s1 + $0xe0] sm:$0xff]   ;;  %v1301_v17 = vld [vmem:[%s1735_s1 + $0xd8] sm:$0xff]   ;;  %v1305_v21 = vld [vmem:[%s1735_s1 + $0xd0] sm:$0xff]  }
   0x7   :  { %v1298_v14 = vld [vmem:[%s1735_s1 + $0x20] sm:$0xff]   ;;  %v1302_v18 = vld [vmem:[%s1735_s1 + $0x18] sm:$0xff]   ;;  %v1306_v22 = vld [vmem:[%s1735_s1 + $0x10] sm:$0xff]  }
   0x8   :  { %1165 = vmatpush3.bf16.msra.mxu0 %v1290_v6  ;;  %v1299_v15 = vld [vmem:[%s1735_s1 + $0xa0] sm:$0xff]   ;;  %v1303_v19 = vld [vmem:[%s1735_s1 + $0x98] sm:$0xff]   ;;  %v1307_v23 = vld [vmem:[%s1735_s1 + $0x90] sm:$0xff]  }
   0x9   :  { %1187 = vmatpush3.bf16.msra.mxu1 %v1291_v7  ;;  %1166 = vmatprep.subr.bf16.mxu0 %v1292_v8  ;;  %v1308_v24 = vld [vmem:[%s1735_s1 + $0x48] sm:$0xff]   ;;  %v1312_v28 = vld [vmem:[%s1735_s1 + $0x40] sm:$0xff]   ;;  %v1328_v46 = vld [vmem:[%s1735_s1 + $0x178] sm:$0xff]  }
   0xa   :  { %1188 = vmatprep.subr.bf16.mxu1 %v1293_v9  ;;  %v1309_v25 = vld [vmem:[%s1735_s1 + $0xc8] sm:$0xff]   ;;  %v1313_v30 = vld [vmem:[%s1735_s1 + $0xc0] sm:$0xff]   ;;  %v1329_v51 = vld [vmem:[%s1735_s1 + $0x1f8] sm:$0xff]  }
   0xb   :  { %v1310_v26 = vld [vmem:[%s1735_s1 + $0x8] sm:$0xff]   ;;  %v1314_v31 = vld [vmem:[%s1735_s1] sm:$0xff]   ;;  %v1330_v60 = vld [vmem:[%s1735_s1 + $0x138] sm:$0xff]  }
   0xc   :  { %1167 = vmatpush3.bf16.msra.mxu0 %v1294_v10  ;;  %v1311_v27 = vld [vmem:[%s1735_s1 + $0x88] sm:$0xff]   ;;  %v1315_v32 = vld [vmem:[%s1735_s1 + $0x80] sm:$0xff]   ;;  %v1331_v1 = vld [vmem:[%s1735_s1 + $0x1b8] sm:$0xff]  }
   0xd   :  { %1189 = vmatpush3.bf16.msra.mxu1 %v1295_v11  ;;  %1168 = vmatprep.subr.bf16.mxu0 %v1296_v12  ;;  %v1316_v36 = vld [vmem:[%s1734_s0] ss:$16 sps:$4 sm:$0xff]   ;;  %v1324_v41 = vld [vmem:[%s1734_s0 + $0x4] ss:$16 sps:$4 sm:$0xff]   ;;  %v1336_v10 = vld [vmem:[%s1735_s1 + $0x168] sm:$0xff]  }
   0xe   :  { %1190 = vmatprep.subr.bf16.mxu1 %v1297_v13  ;;  %v1318_v37 = vld [vmem:[%s1734_s0 + $0x20] ss:$16 sps:$4 sm:$0xff]   ;;  %v1325_v42 = vld [vmem:[%s1734_s0 + $0x24] ss:$16 sps:$4 sm:$0xff]   ;;  %v70_v47 = vrot.slane %v1316_v36, %v1560_v43  ;;  %v77_v52 = vrot.slane %v1324_v41, %v1560_v43  ;;  %v1337_v11 = vld [vmem:[%s1735_s1 + $0x1e8] sm:$0xff]  }
   0xf   :  { %v1320_v39 = vld [vmem:[%s1734_s0 + $0x40] ss:$16 sps:$4 sm:$0xff]   ;;  %v1326_v44 = vld [vmem:[%s1734_s0 + $0x44] ss:$16 sps:$4 sm:$0xff]   ;;  %v84_v48 = vrot.slane %v1318_v37, %v1560_v43  ;;  %v91_v53 = vrot.slane %v1325_v42, %v1560_v43  ;;  %v1338_v12 = vld [vmem:[%s1735_s1 + $0x128] sm:$0xff]  }
  0x10   :  { %1169 = vmatpush3.bf16.msra.mxu0 %v1298_v14  ;;  %v1322_v40 = vld [vmem:[%s1734_s0 + $0x60] ss:$16 sps:$4 sm:$0xff]   ;;  %v1327_v45 = vld [vmem:[%s1734_s0 + $0x64] ss:$16 sps:$4 sm:$0xff]   ;;  %v142_v49 = vrot.slane %v1320_v39, %v1560_v43  ;;  %v149_v54 = vrot.slane %v1326_v44, %v1560_v43  ;;  %v1339_v13 = vld [vmem:[%s1735_s1 + $0x1a8] sm:$0xff]  }
  0x11   :  { %1191 = vmatpush3.bf16.msra.mxu1 %v1299_v15  ;;  %1170 = vmatprep.subr.bf16.mxu0 %v1300_v16  ;;  %v156_v50 = vrot.slane %v1322_v40, %v1560_v43  ;;  %v163_v55 = vrot.slane %v1327_v45, %v1560_v43  ;;  %v93_v56 = vcombine.high %v70_v47, %v84_v48  ;;  %v1332_v4 = vld [vmem:[%s1735_s1 + $0x170] sm:$0xff]   ;;  %v1340_v14 = vld [vmem:[%s1735_s1 + $0x160] sm:$0xff]   ;;  %v1355_v29 = vld [vmem:[%s1735_s1 + $0x188] sm:$0xff]  }
  0x12   :  { %1192 = vmatprep.subr.bf16.mxu1 %v1301_v17  ;;  %v92_v58 = vcombine.low %v70_v47, %v84_v48  ;;  %v95_v61 = vcombine.high %v77_v52, %v91_v53  ;;  %v94_v63 = vcombine.low %v77_v52, %v91_v53  ;;  %v1333_v7 = vld [vmem:[%s1735_s1 + $0x1f0] sm:$0xff]   ;;  %v1341_v15 = vld [vmem:[%s1735_s1 + $0x1e0] sm:$0xff]   ;;  %v1360_v34 = vld [vmem:[%s1734_s0 + $0x8] ss:$16 sps:$4 sm:$0xff]  }
  0x13   :  { %v165_v57 = vcombine.high %v142_v49, %v156_v50  ;;  %v164_v59 = vcombine.low %v142_v49, %v156_v50  ;;  %v167_v62 = vcombine.high %v149_v54, %v163_v55  ;;  %v166_v0 = vcombine.low %v149_v54, %v163_v55  ;;  %v1334_v8 = vld [vmem:[%s1735_s1 + $0x130] sm:$0xff]   ;;  %v1342_v16 = vld [vmem:[%s1735_s1 + $0x120] sm:$0xff]   ;;  %v1362_v35 = vld [vmem:[%s1734_s0 + $0x28] ss:$16 sps:$4 sm:$0xff]  }
  0x14   :  { %1171 = vmatpush3.bf16.msra.mxu0 %v1302_v18  ;;  %v1335_v9 = vld [vmem:[%s1735_s1 + $0x1b0] sm:$0xff]   ;;  %v1343_v17 = vld [vmem:[%s1735_s1 + $0x1a0] sm:$0xff]   ;;  %v1344_v18 = vld [vmem:[%s1735_s1 + $0x158] sm:$0xff]   ;;  %v106_v39 = vrot.slane %v1360_v34, %v1560_v43  ;;  %v120_v40 = vrot.slane %v1362_v35, %v1560_v43 }
  0x15   :  { %1193 = vmatpush3.bf16.msra.mxu1 %v1303_v19  ;;  %1172 = vmatprep.subr.bf16.mxu0 %v1304_v20  ;;  %v221_v2 = vpack.c.bf16 %v165_v57, %v93_v56  ;;  %v220_v3 = vpack.c.bf16 %v164_v59, %v92_v58  ;;  %v223_v5 = vpack.c.bf16 %v167_v62, %v95_v61  ;;  %v1345_v19 = vld [vmem:[%s1735_s1 + $0x1d8] sm:$0xff]   ;;  %v1359_v33 = vld [vmem:[%s1735_s1 + $0x180] sm:$0xff]  }
  0x16   :  { %1194 = vmatprep.subr.bf16.mxu1 %v1305_v21  ;;  %v222_v6 = vpack.c.bf16 %v166_v0, %v94_v63  ;;  %v1346_v20 = vld [vmem:[%s1735_s1 + $0x118] sm:$0xff]   ;;  %v129_v48 = vcombine.high %v106_v39, %v120_v40  ;;  %v128_v53 = vcombine.low %v106_v39, %v120_v40  ;;  %v1373_v0 = vld [vmem:[%s1737_s3 + $0x10] sm:$0xff]   ;;  %v1376_v39 = vld [vmem:[%s1739_s5 + $0x8] sm:$0xff]  }
  0x17   :  { %779 = vmatprep.mubr.bf16.mxu0 %v221_v2  ;;  %820 = vmatprep.mubr.bf16.mxu1 %v223_v5  ;;  %v1347_v21 = vld [vmem:[%s1735_s1 + $0x198] sm:$0xff]   ;;  %v1375_v2 = vld [vmem:[%s1737_s3] sm:$0xff]  }
  0x18   :  { %1173 = vmatpush3.bf16.msra.mxu0 %v1306_v22  ;;  %v1348_v22 = vld [vmem:[%s1735_s1 + $0x150] sm:$0xff]   ;;  %v1364_v36 = vld [vmem:[%s1734_s0 + $0x48] ss:$16 sps:$4 sm:$0xff]   ;;  %v1368_v38 = vld [vmem:[%s1734_s0 + $0xc] ss:$16 sps:$4 sm:$0xff]  }
  0x19   :  { %1195 = vmatpush3.bf16.msra.mxu1 %v1307_v23  ;;  %1174 = vmatprep.subr.bf16.mxu0 %v1308_v24  ;;  %v1349_v23 = vld [vmem:[%s1735_s1 + $0x1d0] sm:$0xff]   ;;  %v1366_v37 = vld [vmem:[%s1734_s0 + $0x68] ss:$16 sps:$4 sm:$0xff]   ;;  %v1369_v41 = vld [vmem:[%s1734_s0 + $0x2c] ss:$16 sps:$4 sm:$0xff]   ;;  %v178_v45 = vrot.slane %v1364_v36, %v1560_v43  ;;  %v113_v47 = vrot.slane %v1368_v38, %v1560_v43 }
  0x1a   :  { %1196 = vmatprep.subr.bf16.mxu1 %v1309_v25  ;;  %v1350_v24 = vld [vmem:[%s1735_s1 + $0x110] sm:$0xff]   ;;  %v1370_v42 = vld [vmem:[%s1734_s0 + $0x4c] ss:$16 sps:$4 sm:$0xff]   ;;  %v127_v49 = vrot.slane %v1369_v41, %v1560_v43  ;;  %v1377_v40 = vld [vmem:[%s1739_s5] sm:$0xff]  }
  0x1b   :  { %v1351_v25 = vld [vmem:[%s1735_s1 + $0x190] sm:$0xff]   ;;  %v1371_v44 = vld [vmem:[%s1734_s0 + $0x6c] ss:$16 sps:$4 sm:$0xff]   ;;  %v185_v50 = vrot.slane %v1370_v42, %v1560_v43  ;;  %v1152_v41 = vld [vmem:[%s1738_s4] ss:$0 sm:$0xff] }
  0x1c   :  { %1175 = vmatpush3.bf16.msra.mxu0 %v1310_v26  ;;  %v1352_v26 = vld [vmem:[%s1735_s1 + $0x148] sm:$0xff]   ;;  %v131_v55 = vcombine.high %v113_v47, %v127_v49  ;;  %v130_v57 = vcombine.low %v113_v47, %v127_v49  ;;  %v1372_v63 = vld [vmem:[%s1737_s3 + $0x18] sm:$0xff]  }
  0x1d   :  { %1197 = vmatpush3.bf16.msra.mxu1 %v1311_v27  ;;  %1176 = vmatprep.subr.bf16.mxu0 %v1312_v28  ;;  %v1353_v27 = vld [vmem:[%s1735_s1 + $0x1c8] sm:$0xff]  }
  0x1e   :  { %1198 = vmatprep.subr.bf16.mxu1 %v1313_v30  ;;  %v1354_v28 = vld [vmem:[%s1735_s1 + $0x108] sm:$0xff]   ;;  %v1356_v30 = vld [vmem:[%s1735_s1 + $0x140] sm:$0xff]  }
  0x20   :  { %1177 = vmatpush3.bf16.msra.mxu0 %v1314_v31  ;;  %v1357_v31 = vld [vmem:[%s1735_s1 + $0x1c0] sm:$0xff]  }
  0x21   :  { %1199 = vmatpush3.bf16.msra.mxu1 %v1315_v32  ;;  %1206 = vmatprep.subr.bf16.mxu0 %v1328_v46  ;;  %v1358_v32 = vld [vmem:[%s1735_s1 + $0x100] sm:$0xff]   ;;  %v192_v46 = vrot.slane %v1366_v37, %v1560_v43 }
  0x22   :  { %1228 = vmatprep.subr.bf16.mxu1 %v1329_v51  ;;  %v199_v51 = vrot.slane %v1371_v44, %v1560_v43  ;;  %v1401_v43 = vmov 0.0  }
  0x23   :  { %780 = vmatmul.mubr.bf16.vlgmr.msra.gmra.mxu0 %v220_v3  ;;  %v201_v52 = vcombine.high %v178_v45, %v192_v46  ;;  %v200_v54 = vcombine.low %v178_v45, %v192_v46 }
  0x24   :  { %821 = vmatmul.mubr.bf16.vlgmr.msra.gmra.mxu1 %v222_v6  ;;  %1207 = vmatpush3.bf16.msra.mxu0 %v1330_v60  ;;  %v203_v56 = vcombine.high %v185_v50, %v199_v51  ;;  %v202_v58 = vcombine.low %v185_v50, %v199_v51 }
  0x25   :  { %1229 = vmatpush3.bf16.msra.mxu1 %v1331_v1  ;;  %1208 = vmatprep.subr.bf16.mxu0 %v1332_v4  ;;  %v225_v59 = vpack.c.bf16 %v201_v52, %v129_v48  ;;  %v224_v60 = vpack.c.bf16 %v200_v54, %v128_v53  ;;  %v1374_v1 = vld [vmem:[%s1737_s3 + $0x8] sm:$0xff]   ;;  %v1158_v52 = vld [vmem:[%s1740_s6] ss:$0 sm:$0xff] }
  0x26   :  { %1230 = vmatprep.subr.bf16.mxu1 %v1333_v7  ;;  %v227_v61 = vpack.c.bf16 %v203_v56, %v131_v55  ;;  %v226_v62 = vpack.c.bf16 %v202_v58, %v130_v57 }
  0x27   :  { %861 = vmatprep.mubr.bf16.mxu0 %v225_v59 }
  0x28   :  { %1209 = vmatpush3.bf16.msra.mxu0 %v1334_v8  ;;  %902 = vmatprep.mubr.bf16.mxu1 %v227_v61 }
  0x29   :  { %1231 = vmatpush3.bf16.msra.mxu1 %v1335_v9  ;;  %1210 = vmatprep.subr.bf16.mxu0 %v1336_v10  ;;  %v1087_v10 = vld [vmem:[%s1736_s2] ss:$0 sm:$0xff] }
  0x2a   :  { %1232 = vmatprep.subr.bf16.mxu1 %v1337_v11 }
  0x2c   :  { %1211 = vmatpush3.bf16.msra.mxu0 %v1338_v12 }
  0x2d   :  { %1233 = vmatpush3.bf16.msra.mxu1 %v1339_v13  ;;  %1212 = vmatprep.subr.bf16.mxu0 %v1340_v14 }
  0x2e   :  { %1234 = vmatprep.subr.bf16.mxu1 %v1341_v15 }
  0x30   :  { %1213 = vmatpush3.bf16.msra.mxu0 %v1342_v16 }
  0x31   :  { %1235 = vmatpush3.bf16.msra.mxu1 %v1343_v17  ;;  %1214 = vmatprep.subr.bf16.mxu0 %v1344_v18 }
  0x32   :  { %1236 = vmatprep.subr.bf16.mxu1 %v1345_v19 }
  0x34   :  { %1215 = vmatpush3.bf16.msra.mxu0 %v1346_v20 }
  0x35   :  { %1237 = vmatpush3.bf16.msra.mxu1 %v1347_v21  ;;  %1216 = vmatprep.subr.bf16.mxu0 %v1348_v22 }
  0x36   :  { %1238 = vmatprep.subr.bf16.mxu1 %v1349_v23 }
  0x38   :  { %1217 = vmatpush3.bf16.msra.mxu0 %v1350_v24 }
  0x39   :  { %1239 = vmatpush3.bf16.msra.mxu1 %v1351_v25  ;;  %1218 = vmatprep.subr.bf16.mxu0 %v1352_v26 }
  0x3a   :  { %1240 = vmatprep.subr.bf16.mxu1 %v1353_v27 }
  0x3c   :  { %1219 = vmatpush3.bf16.msra.mxu0 %v1354_v28 }
  0x3d   :  { %1241 = vmatpush3.bf16.msra.mxu1 %v1355_v29  ;;  %1220 = vmatprep.subr.bf16.mxu0 %v1356_v30 }
  0x3e   :  { %1242 = vmatprep.subr.bf16.mxu1 %v1357_v31 }
  0x40   :  { %1221 = vmatpush3.bf16.msra.mxu0 %v1358_v32 }
  0x41   :  { %1243 = vmatpush3.bf16.msra.mxu1 %v1359_v33  ;;  %1258 = vmatprep.subr.bf16.mxu0 %v1401_v43 }
  0x42   :  { %1270 = vmatprep.subr.bf16.mxu1 %v1401_v43 }
  0x43   :  { %862 = vmatmul.mubr.bf16.vlgmr.msra.gmra.mxu0 %v224_v60 }
  0x44   :  { %903 = vmatmul.mubr.bf16.vlgmr.msra.gmra.mxu1 %v226_v62  ;;  %1259 = vmatpush3.bf16.msra.mxu0 %v1372_v63 }
  0x45   :  { %1260 = vmatprep.subr.bf16.mxu0 %v1401_v43  ;;  %1266 = vmatprep.mubr.msk.bf16.mxu0 %vm1402_vm0, %v1401_v43 }
  0x46   :  { %1274 = vmatprep.mubr.msk.bf16.mxu1 %vm1402_vm0, %v1401_v43  ;;  %1271 = vmatpush3.bf16.msra.mxu1 %v1376_v39 }
  0x47   :  { %1272 = vmatprep.subr.bf16.mxu1 %v1401_v43 }
  0x48   :  { %1261 = vmatpush3.bf16.msra.mxu0 %v1373_v0 }
  0x49   :  { %1262 = vmatprep.subr.bf16.mxu0 %v1401_v43 }
  0x4a   :  { %1273 = vmatpush3.bf16.msra.mxu1 %v1377_v40 }
  0x4c   :  { %1263 = vmatpush3.bf16.msra.mxu0 %v1374_v1 }
  0x4d   :  { %1264 = vmatprep.subr.bf16.mxu0 %v1401_v43 }
  0x50   :  { %1265 = vmatpush3.bf16.msra.mxu0 %v1375_v2 }
  0xe3   :  { %v1178_v3 = vpop.f32.mrf.mxu0 }
  0xe4   :  { %v1200_v4 = vpop.f32.mrf.mxu1 }
  0xe5   :  { %v1179_v5 = vpop.f32.mrf.mxu0 }
  0xe6   :  { %v1201_v6 = vpop.f32.mrf.mxu1  ;;  %v1180_v8 = vadd.f32 %v1179_v5, %v1178_v3 }
  0xe7   :  { %v1181_v7 = vpop.f32.mrf.mxu0  ;;  %v1202_v13 = vadd.f32 %v1201_v6, %v1200_v4 }
  0xe8   :  { %v1203_v9 = vpop.f32.mrf.mxu1  ;;  %v782_v12 = vadd.f32 %v1180_v8, %v1087_v10 }
  0xe9   :  { %v1182_v11 = vpop.f32.mrf.mxu0 }
  0xea   :  { %v1183_v14 = vadd.f32 %v1182_v11, %v1181_v7  ;;  %v1204_v15 = vpop.f32.mrf.mxu1  ;;  %v823_v19 = vadd.f32 %v1202_v13, %v782_v12 }
  0xeb   :  { %v1205_v24 = vadd.f32 %v1204_v15, %v1203_v9 }
  0xec   :  { %v785_v20 = vadd.f32 %v1183_v14, %v1087_v10 }
  0xee   :  { %v826_v28 = vadd.f32 %v1205_v24, %v785_v20 }
 0x103   :  { %v1222_v16 = vpop.f32.mrf.mxu0 }
 0x104   :  { %v1244_v17 = vpop.f32.mrf.mxu1 }
 0x105   :  { %v1223_v18 = vpop.f32.mrf.mxu0 }
 0x106   :  { %v1224_v21 = vadd.f32 %v1223_v18, %v1222_v16  ;;  %v1245_v22 = vpop.f32.mrf.mxu1 }
 0x107   :  { %v1225_v23 = vpop.f32.mrf.mxu0  ;;  %v1246_v29 = vadd.f32 %v1245_v22, %v1244_v17 }
 0x108   :  { %v864_v25 = vadd.f32 %v1224_v21, %v823_v19  ;;  %v1247_v26 = vpop.f32.mrf.mxu1 }
 0x109   :  { %v1226_v27 = vpop.f32.mrf.mxu0 }
 0x10a   :  { %v1227_v30 = vadd.f32 %v1226_v27, %v1225_v23  ;;  %v1248_v31 = vpop.f32.mrf.mxu1  ;;  %v905_v32 = vadd.f32 %v1246_v29, %v864_v25 }
 0x10b   :  { %v1249_v34 = vadd.f32 %v1248_v31, %v1247_v26 }
 0x10c   :  { %v867_v33 = vadd.f32 %v1227_v30, %v826_v28  ;;  %v911_v36 = vmax.f32 %v905_v32, 0.0 }
 0x10e   :  { %v908_v35 = vadd.f32 %v1249_v34, %v867_v33 }
 0x110   :  { %v912_v37 = vmax.f32 %v908_v35, 0.0 }
 0x112   :  { %v913_v38 = vpack.c.bf16 %v912_v37, %v911_v36 }
 0x114   :  { %1267 = vmatmul.mubr.msk.bf16.vlgmr.msra.gmra.mxu0 %vm953_vm1, %v913_v38 }
 0x1d4   :  { %v991_v42 = vpop.f32.mrf.mxu0 }
 0x1d5   :  { %v992_v45 = vadd.f32 %v1152_v41, %v991_v42 }
 0x1d6   :  { %v1268_v44 = vpop.f32.mrf.mxu0 }
 0x1d7   :  { %v998_v49 = vmax.f32 %v992_v45, 0.0 }
 0x1d8   :  { %v994_v46 = vpop.f32.mrf.mxu0 }
 0x1d9   :  { %v995_v47 = vadd.f32 %v1152_v41, %v994_v46 }
 0x1da   :  { %v1269_v48 = vpop.f32.mrf.mxu0 }
 0x1db   :  { %v999_v50 = vmax.f32 %v995_v47, 0.0 }
 0x1dd   :  { %v1000_v51 = vpack.c.bf16 %v999_v50, %v998_v49 }
 0x1df   :  { %1275 = vmatmul.mubr.msk.bf16.vlgmr.msra.gmra.mxu1 %vm1024_vm2, %v1000_v51 }
 0x29f   :  { %v1062_v53 = vpop.f32.mrf.mxu1 }
 0x2a0   :  { %v1063_v54 = vadd.f32 %v1158_v52, %v1062_v53 }
 0x2a1   :  { %v1276_v55 = vpop.f32.mrf.mxu1 }
 0x2a2   :  { %1069 = vst [vmem:[#allocation2] sm:$0xff] %v1063_v54 }
 0x2a3   :  { %v1065_v56 = vpop.f32.mrf.mxu1 }
 0x2a4   :  { %v1066_v57 = vadd.f32 %v1158_v52, %v1065_v56 }
 0x2a5   :  { %v1277_v58 = vpop.f32.mrf.mxu1 }
 0x2a6   :  { %1070 = vst [vmem:[#allocation2 + $0x8] sm:$0xff] %v1066_v57 }
 0x2a7   :  { %1075 = vsyncadd [#allocation3], 224  ;;  %s1403_s4 = smov [#allocation2]  }
 0x2a8   :  { %s1076_s5 = sshll.u32 %s1403_s4, 4  ;;  %s1077_s5 = int_to_ptr.vmem [resolvable:$true] %s1076_s5 }
 0x2a9   :  { %s1378_s14 = scalar_lea.vmem %s1077_s5, 32  ;;  %s1382_s1 = scalar_lea.vmem %s1077_s5, 256 }
 0x2aa   :  { %p1379_p0 = scmp.ne.s32.totalorder %s1077_s5, %s1378_s14  ;;  %p1383_p1 = scmp.lt.s32.totalorder %s1077_s5, %s1077_s5 }
 0x2ab   :  { %p1384_p2 = scmp.lt.s32.totalorder %s1382_s1, %s1378_s14 }
 0x2ad   :  { %p1385_p3 = por %p1384_p2, %p1383_p1 }
 0x2af   :  { %p1386_p4 = pnand %p1385_p3, %p1379_p0 }
 0x2b1   :  { %1389 = shalt.err (!%p1386_p4)
}
 0x2b2   :  { %s1404_s6 = smov 32   ;;  %s1405_s15 = smov 2  }
 0x2b3   :  { %1082 = dma.vmem_to_hbm [thread:$0]  %s1077_s5, 32, %s1741_s7, [#allocation3], %s1404_s6, %s1404_s6, %s1405_s15  }
 0x2b4   :  { %1398 = dma.done.wait [#allocation3], 256  }
 0x2b5   :  { %1399 = vsyncadd [#allocation3], 4294967040 }
 0x2b6   :  { %1086 = vsyncpa [#allocation3], 1 }

</bundles_post_ra>
